<compile_context>
chip_gen: v7x
topology: tpu7x:2x2x1
jax: 0.10.0
libtpu: 0.0.40
codegen_flags: <defaults>
</compile_context>

<pallas_src>
import functools

import jax
import jax.numpy as jnp
import numpy as np
from jax.experimental import pallas as pl
from jax.experimental.pallas import tpu as pltpu


_DEFAULT_BATCH_TILE = 512  # multiple of 128: good HBM-roofline tile, fills MXU rows


# ----------------------------- Pallas kernel --------------------------------
def _siren_mlp_kernel(*refs, num_layers):
    # refs = (x_ref, w_0, b_0, w_1, b_1, ..., w_{L-1}, b_{L-1}, o_ref)
    x_ref = refs[0]
    o_ref = refs[-1]
    param_refs = refs[1:-1]

    # First dot consumes x in its stored dtype (bf16 or f32) and accumulates in f32
    # on the MXU.  The SIREN w0 scales are pre-folded into the weights/biases.
    h = x_ref[...]
    for layer in range(num_layers):
        w_ref = param_refs[2 * layer]
        b_ref = param_refs[2 * layer + 1]
        h = jnp.dot(h, w_ref[...], preferred_element_type=jnp.float32) + b_ref[...]
        if layer < num_layers - 1:
            h = jnp.sin(h)
        # last layer: linear, no activation
    o_ref[...] = h.astype(o_ref.dtype)


def siren_forward(x, weights, biases, *, batch_tile=None):
    """x: [B, D] (f32 or bf16).  weights[i]: [in_i, out_i].  biases[i]: [1, out_i] f32.

    Weights are expected to already have the SIREN w0 scales folded in.
    """
    B, D = x.shape
    num_layers = len(weights)
    out_dim = int(weights[-1].shape[1])

    # --- batch tiling -------------------------------------------------------
    if batch_tile is None:
        batch_tile = _DEFAULT_BATCH_TILE
    batch_tile = int(min(int(batch_tile), B))
    num_tiles = int(pl.cdiv(B, batch_tile))
    if num_tiles > 1 and batch_tile % 8 != 0:
        raise ValueError("batch_tile must be a multiple of 8 when tiling the batch")
    grid = (num_tiles,)

    kernel = functools.partial(_siren_mlp_kernel, num_layers=num_layers)

    in_specs = [pl.BlockSpec((batch_tile, D), lambda i: (i, 0))]
    args = [x]
    for w, b in zip(weights, biases):
        # Full-array blocks; same block index every grid step -> VMEM-resident.
        in_specs.append(pl.BlockSpec(w.shape, lambda i: (0, 0)))
        in_specs.append(pl.BlockSpec(b.shape, lambda i: (0, 0)))
        args.append(w)
        args.append(b)

    out_spec = pl.BlockSpec((batch_tile, out_dim), lambda i: (i, 0))
    # TODO(synk): out_dim (=8) < 128 lanes -> masked vst on writeback; padding the
    # output feature dim to 128 is possible but output traffic is negligible vs the
    # [B, D] input stream, so it is not worth the extra VMEM / wrapper slice.

    # Advisory cost estimate so XLA schedules neighbours around the custom call.
    flops = 2 * B * sum(int(w.shape[0]) * int(w.shape[1]) for w in weights)
    transcendentals = B * sum(int(w.shape[1]) for w in weights[:-1])
    bytes_accessed = (
        x.size * x.dtype.itemsize
        + sum(w.size * w.dtype.itemsize + b.size * b.dtype.itemsize
              for w, b in zip(weights, biases))
        + B * out_dim * 4
    )

    out = pl.pallas_call(
        kernel,
        out_shape=jax.ShapeDtypeStruct((B, out_dim), jnp.float32),
        grid_spec=pltpu.PrefetchScalarGridSpec(
            num_scalar_prefetch=0,
            grid=grid,
            in_specs=in_specs,
            out_specs=out_spec,
        ),
        compiler_params=pltpu.CompilerParams(
            dimension_semantics=("parallel",),   # megacore-shard batch tiles on v7x
            vmem_limit_bytes=32 * 1024 * 1024,   # well above need; safe on v7x 64 MiB
        ),
        cost_estimate=pl.CostEstimate(
            flops=flops,
            transcendentals=transcendentals,
            bytes_accessed=bytes_accessed,
        ),
    )(*args)
    return out


# ------------------------- parameter construction ---------------------------
def init_siren_params(key, input_dim, hidden_sizes, output_dim, *, w0=1.0, c=6.0):
    """Deterministic SIREN init ('siren' initializer), f32, unscaled:
       first layer  ~ U(-1/in, 1/in)
       later layers ~ U(-sqrt(c/in)/w0, sqrt(c/in)/w0)
    """
    dims = [input_dim] + list(hidden_sizes) + [output_dim]
    weights, biases = [], []
    for i in range(len(dims) - 1):
        fan_in, fan_out = dims[i], dims[i + 1]
        key, wk, bk = jax.random.split(key, 3)
        if i == 0:
            bound = 1.0 / fan_in
        else:
            bound = float(np.sqrt(c / fan_in)) / w0
        w = jax.random.uniform(wk, (fan_in, fan_out), jnp.float32, -bound, bound)
        b = jax.random.uniform(bk, (1, fan_out), jnp.float32, -bound, bound)
        weights.append(w)
        biases.append(b)
    return weights, biases


# ------------------------------ module wrapper -------------------------------
class MySirenPallas:
    """JAX/Pallas equivalent of My_Siren (softmax=False, concat=False, num_atoms=1,
    dueling_param=None, flatten_input=True)."""

    def __init__(self, state_shape, action_shape=0, hidden_sizes=(), key=None,
                 input_dtype=jnp.bfloat16, batch_tile=None):
        input_dim = int(np.prod(state_shape))
        action_dim = int(np.prod(action_shape))  # num_atoms = 1
        hidden_sizes = list(hidden_sizes)
        output_dim = action_dim if action_dim > 0 else hidden_sizes[-1]
        self.output_dim = output_dim
        self.w0 = 1.0
        self.w0_initial = 30.0
        self.input_dtype = input_dtype
        self.batch_tile = batch_tile
        if key is None:
            key = jax.random.PRNGKey(0)

        # Raw f32 parameters (exact module semantics), kept for reference checks.
        self.ref_weights, self.ref_biases = init_siren_params(
            key, input_dim, hidden_sizes, output_dim, w0=self.w0, c=6.0
        )

        # Kernel parameters: w0 scales folded in once; first-layer weight stored in
        # input_dtype so the dominant matmul runs on the MXU's bf16 path.
        n = len(self.ref_weights)
        kw, kb = [], []
        for i, (w, b) in enumerate(zip(self.ref_weights, self.ref_biases)):
            if i == 0:
                scale = self.w0_initial
            elif i < n - 1:
                scale = self.w0
            else:
                scale = 1.0
            w = w * scale
            b = b * scale
            if i == 0:
                w = w.astype(self.input_dtype)
            kw.append(w)
            kb.append(b)
        self.kernel_weights = kw
        self.kernel_biases = kb

    def __call__(self, obs, state=None):
        obs = jnp.asarray(obs)
        # torch .flatten(1); cast to the kernel input dtype (bf16 halves input DMA).
        x = obs.reshape(obs.shape[0], -1).astype(self.input_dtype)
        logits = siren_forward(
            x, self.kernel_weights, self.kernel_biases, batch_tile=self.batch_tile
        )
        # num_atoms == 1, no dueling, softmax=False -> logits unchanged
        return logits, state


# ---------------------------------- main -------------------------------------
if __name__ == "__main__":
    key = jax.random.PRNGKey(0)
    key, obs_key, obs_key2, param_key = jax.random.split(key, 4)

    # obs in NCHW: batch=2, channels=4, spatial=16x16 -> flattened input_dim=1024
    B, C, H, W = 2, 4, 16, 16
    obs = jax.random.normal(obs_key, (B, C, H, W), dtype=jnp.float32)

    model = MySirenPallas(
        state_shape=(C, H, W),
        action_shape=8,
        hidden_sizes=(32, 32),
        key=param_key,
    )

    logits, state = model(obs)
    logits = jax.block_until_ready(logits)
    assert logits.shape == (B, model.output_dim)

    # --- Reference A: same numerics as the kernel (folded weights, bf16 1st matmul).
    def ref_kernel_numerics(x2d):
        h = x2d.astype(model.input_dtype)
        n = len(model.kernel_weights)
        for i, (w, b) in enumerate(zip(model.kernel_weights, model.kernel_biases)):
            h = jnp.dot(h, w, preferred_element_type=jnp.float32) + b
            if i < n - 1:
                h = jnp.sin(h)
        return h

    x2d = obs.reshape(B, -1)
    np.testing.assert_allclose(
        np.asarray(logits), np.asarray(ref_kernel_numerics(x2d)), rtol=1e-2, atol=1e-2
    )

    # --- Reference B: full-f32 module semantics (unfolded weights, explicit w0).
    def ref_f32(x2d):
        h = x2d.astype(jnp.float32)
        n = len(model.ref_weights)
        for i, (w, b) in enumerate(zip(model.ref_weights, model.ref_biases)):
            h = h @ w + b
            if i == 0:
                h = jnp.sin(model.w0_initial * h)
            elif i < n - 1:
                h = jnp.sin(model.w0 * h)
        return h

    np.testing.assert_allclose(
        np.asarray(logits), np.asarray(ref_f32(x2d)), rtol=0.0, atol=6e-2
    )

    # --- Exercise the tiled multi-grid-step path with a ragged final block.
    B2 = 10
    obs2 = jax.random.normal(obs_key2, (B2, C, H, W), dtype=jnp.float32)
    model2 = MySirenPallas(
        state_shape=(C, H, W),
        action_shape=8,
        hidden_sizes=(32, 32),
        key=param_key,
        batch_tile=8,  # grid=(2,), last block partial (rows 8..9 valid)
    )
    logits2, _ = model2(obs2)
    logits2 = jax.block_until_ready(logits2)
    assert logits2.shape == (B2, model2.output_dim)
    np.testing.assert_allclose(
        np.asarray(logits2),
        np.asarray(ref_kernel_numerics(obs2.reshape(B2, -1))),
        rtol=1e-2,
        atol=1e-2,
    )

    print("KERNEL_OK")
</pallas_src>

<mosaic_0001>
module attributes {stable_mosaic.version = 11 : i64} {
  func.func @_siren_mlp_kernel(%arg0: i32, %arg1: memref<2x1024xbf16, #tpu.memory_space<vmem>>, %arg2: memref<1024x32xbf16, #tpu.memory_space<vmem>>, %arg3: memref<1x32xf32, #tpu.memory_space<vmem>>, %arg4: memref<32x32xf32, #tpu.memory_space<vmem>>, %arg5: memref<1x32xf32, #tpu.memory_space<vmem>>, %arg6: memref<32x8xf32, #tpu.memory_space<vmem>>, %arg7: memref<1x8xf32, #tpu.memory_space<vmem>>, %arg8: memref<2x8xf32, #tpu.memory_space<vmem>>) attributes {dimension_semantics = [#tpu.dimension_semantics<parallel>], iteration_bounds = array<i64: 1>, scalar_prefetch = 0 : i64, scratch_operands = 0 : i64, tpu.core_type = #tpu.core_type<tc>, window_params = [{transform_indices = @transform_0, window_bounds = array<i64: 2, 1024>}, {pipeline_mode = #tpu.pipeline_mode<synchronous>, transform_indices = @transform_1, window_bounds = array<i64: 1024, 32>}, {pipeline_mode = #tpu.pipeline_mode<synchronous>, transform_indices = @transform_2, window_bounds = array<i64: 1, 32>}, {pipeline_mode = #tpu.pipeline_mode<synchronous>, transform_indices = @transform_3, window_bounds = array<i64: 32, 32>}, {pipeline_mode = #tpu.pipeline_mode<synchronous>, transform_indices = @transform_4, window_bounds = array<i64: 1, 32>}, {pipeline_mode = #tpu.pipeline_mode<synchronous>, transform_indices = @transform_5, window_bounds = array<i64: 32, 8>}, {pipeline_mode = #tpu.pipeline_mode<synchronous>, transform_indices = @transform_6, window_bounds = array<i64: 1, 8>}, {transform_indices = @transform_7, window_bounds = array<i64: 2, 8>}]} {
    %c0 = arith.constant 0 : index
    %c0_0 = arith.constant 0 : index
    %0 = vector.load %arg1[%c0, %c0_0] : memref<2x1024xbf16, #tpu.memory_space<vmem>>, vector<2x1024xbf16>
    %c0_1 = arith.constant 0 : index
    %c0_2 = arith.constant 0 : index
    %1 = vector.load %arg2[%c0_1, %c0_2] : memref<1024x32xbf16, #tpu.memory_space<vmem>>, vector<1024x32xbf16>
    %cst = arith.constant dense<0.000000e+00> : vector<2x32xf32>
    %2 = tpu.matmul %0, %1, %cst {dimension_numbers = #tpu.dot_dimension_numbers<[1], [0], [0], [1], [0, 0, 1, 1], [], []>} : vector<2x1024xbf16>, vector<1024x32xbf16>, vector<2x32xf32> -> vector<2x32xf32>
    %c0_3 = arith.constant 0 : index
    %c0_4 = arith.constant 0 : index
    %3 = vector.load %arg3[%c0_3, %c0_4] : memref<1x32xf32, #tpu.memory_space<vmem>>, vector<1x32xf32>
    %4 = vector.broadcast %3 : vector<1x32xf32> to vector<2x32xf32>
    %5 = arith.addf %2, %4 : vector<2x32xf32>
    %6 = math.sin %5 : vector<2x32xf32>
    %c0_5 = arith.constant 0 : index
    %c0_6 = arith.constant 0 : index
    %7 = vector.load %arg4[%c0_5, %c0_6] : memref<32x32xf32, #tpu.memory_space<vmem>>, vector<32x32xf32>
    %cst_7 = arith.constant dense<0.000000e+00> : vector<2x32xf32>
    %8 = tpu.matmul %6, %7, %cst_7 {dimension_numbers = #tpu.dot_dimension_numbers<[1], [0], [0], [1], [0, 0, 1, 1], [], []>} : vector<2x32xf32>, vector<32x32xf32>, vector<2x32xf32> -> vector<2x32xf32>
    %c0_8 = arith.constant 0 : index
    %c0_9 = arith.constant 0 : index
    %9 = vector.load %arg5[%c0_8, %c0_9] : memref<1x32xf32, #tpu.memory_space<vmem>>, vector<1x32xf32>
    %10 = vector.broadcast %9 : vector<1x32xf32> to vector<2x32xf32>
    %11 = arith.addf %8, %10 : vector<2x32xf32>
    %12 = math.sin %11 : vector<2x32xf32>
    %c0_10 = arith.constant 0 : index
    %c0_11 = arith.constant 0 : index
    %13 = vector.load %arg6[%c0_10, %c0_11] : memref<32x8xf32, #tpu.memory_space<vmem>>, vector<32x8xf32>
    %cst_12 = arith.constant dense<0.000000e+00> : vector<2x8xf32>
    %14 = tpu.matmul %12, %13, %cst_12 {dimension_numbers = #tpu.dot_dimension_numbers<[1], [0], [0], [1], [0, 0, 1, 1], [], []>} : vector<2x32xf32>, vector<32x8xf32>, vector<2x8xf32> -> vector<2x8xf32>
    %c0_13 = arith.constant 0 : index
    %c0_14 = arith.constant 0 : index
    %15 = vector.load %arg7[%c0_13, %c0_14] : memref<1x8xf32, #tpu.memory_space<vmem>>, vector<1x8xf32>
    %16 = vector.broadcast %15 : vector<1x8xf32> to vector<2x8xf32>
    %17 = arith.addf %14, %16 : vector<2x8xf32>
    %c0_15 = arith.constant 0 : index
    %c0_16 = arith.constant 0 : index
    %18 = vector.load %arg8[%c0_15, %c0_16] : memref<2x8xf32, #tpu.memory_space<vmem>>, vector<2x8xf32>
    tpu.vector_store %arg8[%c0_15, %c0_16], %17 {strides = array<i32>} : memref<2x8xf32, #tpu.memory_space<vmem>>, vector<2x8xf32>,
    return
  }
  func.func @transform_0(%arg0: i32) -> (i32, i32) {
    %c0_i32 = arith.constant 0 : i32
    %c0_i32_0 = arith.constant 0 : i32
    return %arg0, %c0_i32 : i32, i32
  }
  func.func @transform_1(%arg0: i32) -> (i32, i32) {
    %c0_i32 = arith.constant 0 : i32
    %c0_i32_0 = arith.constant 0 : i32
    %c0_i32_1 = arith.constant 0 : i32
    return %c0_i32, %c0_i32_0 : i32, i32
  }
  func.func @transform_2(%arg0: i32) -> (i32, i32) {
    %c0_i32 = arith.constant 0 : i32
    %c0_i32_0 = arith.constant 0 : i32
    %c0_i32_1 = arith.constant 0 : i32
    return %c0_i32, %c0_i32_0 : i32, i32
  }
  func.func @transform_3(%arg0: i32) -> (i32, i32) {
    %c0_i32 = arith.constant 0 : i32
    %c0_i32_0 = arith.constant 0 : i32
    %c0_i32_1 = arith.constant 0 : i32
    return %c0_i32, %c0_i32_0 : i32, i32
  }
  func.func @transform_4(%arg0: i32) -> (i32, i32) {
    %c0_i32 = arith.constant 0 : i32
    %c0_i32_0 = arith.constant 0 : i32
    %c0_i32_1 = arith.constant 0 : i32
    return %c0_i32, %c0_i32_0 : i32, i32
  }
  func.func @transform_5(%arg0: i32) -> (i32, i32) {
    %c0_i32 = arith.constant 0 : i32
    %c0_i32_0 = arith.constant 0 : i32
    %c0_i32_1 = arith.constant 0 : i32
    return %c0_i32, %c0_i32_0 : i32, i32
  }
  func.func @transform_6(%arg0: i32) -> (i32, i32) {
    %c0_i32 = arith.constant 0 : i32
    %c0_i32_0 = arith.constant 0 : i32
    %c0_i32_1 = arith.constant 0 : i32
    return %c0_i32, %c0_i32_0 : i32, i32
  }
  func.func @transform_7(%arg0: i32) -> (i32, i32) {
    %c0_i32 = arith.constant 0 : i32
    %c0_i32_0 = arith.constant 0 : i32
    return %arg0, %c0_i32 : i32, i32
  }
}

</mosaic_0001>

<bundles_post_ra>
// kernel: tpu_custom_call.1
= control target key start
LH: loop header
LB: loop body
LE: loop exit
PB: predicated region body
PF: predicated region fallthrough
CT: control target
= control target key end

     0   :  { %v169_v28 = vlaneseq  ;;  %v1484_v36 = vmov 1966171168   ;;  %s1858_s0 = inlined_call_operand.vmem [shape: bf16[2,1024], index: 0, kind: input, shape index: {}]   ;;  %s1859_s1 = inlined_call_operand.vmem [shape: bf16[1024,32], index: 1, kind: input, shape index: {}]   ;;  %s1860_s2 = inlined_call_operand.vmem [shape: f32[1,32], index: 2, kind: input, shape index: {}]   ;;  %s1861_s3 = inlined_call_operand.vmem [shape: f32[32,32], index: 3, kind: input, shape index: {}]   ;;  %s1862_s4 = inlined_call_operand.vmem [shape: f32[1,32], index: 4, kind: input, shape index: {}]   ;;  %s1863_s5 = inlined_call_operand.vmem [shape: f32[32,8], index: 5, kind: input, shape index: {}]   ;;  %s1864_s6 = inlined_call_operand.vmem [shape: f32[1,8], index: 6, kind: input, shape index: {}]   ;;  %s1865_s7 = inlined_call_operand.hbm [shape: f32[2,8], index: 7, kind: output, shape index: {}]  }
   0x1   :  { %v1387_v0 = vld [vmem:[%s1859_s1 + $0x40] sm:$0xff]   ;;  %v1391_v4 = vld [vmem:[%s1859_s1 + $0x48] sm:$0xff]   ;;  %v1395_v8 = vld [vmem:[%s1859_s1 + $0x50] sm:$0xff]   ;;  %v167_v37 = vunpack.c.l.s4 %v1484_v36 }
   0x2   :  { %v1388_v1 = vld [vmem:[%s1859_s1 + $0xc0] sm:$0xff]   ;;  %1236 = vmatprep.subr.bf16.mxu0 %v1387_v0  ;;  %v1392_v5 = vld [vmem:[%s1859_s1 + $0xc8] sm:$0xff]   ;;  %v1396_v9 = vld [vmem:[%s1859_s1 + $0xd0] sm:$0xff]   ;;  %v170_v33 = vshrl.u32 %v169_v28, 7 }
   0x3   :  { %v1389_v2 = vld [vmem:[%s1859_s1] sm:$0xff]   ;;  %1258 = vmatprep.subr.bf16.mxu1 %v1388_v1  ;;  %v1393_v6 = vld [vmem:[%s1859_s1 + $0x8] sm:$0xff]   ;;  %v1397_v10 = vld [vmem:[%s1859_s1 + $0x10] sm:$0xff]   ;;  %v168_v40 = vunpack.c.0.s8 %v167_v37 }
   0x4   :  { %v1390_v3 = vld [vmem:[%s1859_s1 + $0x80] sm:$0xff]   ;;  %1237 = vmatpush3.bf16.msra.mxu0 %v1389_v2  ;;  %v1394_v7 = vld [vmem:[%s1859_s1 + $0x88] sm:$0xff]   ;;  %v1398_v11 = vld [vmem:[%s1859_s1 + $0x90] sm:$0xff]  }
   0x5   :  { %1259 = vmatpush3.bf16.msra.mxu1 %v1390_v3  ;;  %1238 = vmatprep.subr.bf16.mxu0 %v1391_v4  ;;  %v1399_v12 = vld [vmem:[%s1859_s1 + $0x58] sm:$0xff]   ;;  %v1403_v16 = vld [vmem:[%s1859_s1 + $0x60] sm:$0xff]   ;;  %v1407_v20 = vld [vmem:[%s1859_s1 + $0x68] sm:$0xff]   ;;  %v1640_v41 = vsub.s32 %v168_v40, %v170_v33 }
   0x6   :  { %1260 = vmatprep.subr.bf16.mxu1 %v1392_v5  ;;  %v1400_v13 = vld [vmem:[%s1859_s1 + $0xd8] sm:$0xff]   ;;  %v1404_v17 = vld [vmem:[%s1859_s1 + $0xe0] sm:$0xff]   ;;  %v1408_v21 = vld [vmem:[%s1859_s1 + $0xe8] sm:$0xff]  }
   0x7   :  { %v1401_v14 = vld [vmem:[%s1859_s1 + $0x18] sm:$0xff]   ;;  %v1405_v18 = vld [vmem:[%s1859_s1 + $0x20] sm:$0xff]   ;;  %v1409_v22 = vld [vmem:[%s1859_s1 + $0x28] sm:$0xff]  }
   0x8   :  { %1239 = vmatpush3.bf16.msra.mxu0 %v1393_v6  ;;  %v1402_v15 = vld [vmem:[%s1859_s1 + $0x98] sm:$0xff]   ;;  %v1406_v19 = vld [vmem:[%s1859_s1 + $0xa0] sm:$0xff]   ;;  %v1410_v23 = vld [vmem:[%s1859_s1 + $0xa8] sm:$0xff]  }
   0x9   :  { %1261 = vmatpush3.bf16.msra.mxu1 %v1394_v7  ;;  %1240 = vmatprep.subr.bf16.mxu0 %v1395_v8  ;;  %v1411_v24 = vld [vmem:[%s1859_s1 + $0x70] sm:$0xff]   ;;  %v1415_v29 = vld [vmem:[%s1859_s1 + $0x78] sm:$0xff]   ;;  %v28_v34 = vld [vmem:[%s1858_s0] sm:$0xff] }
   0xa   :  { %1262 = vmatprep.subr.bf16.mxu1 %v1396_v9  ;;  %v1412_v25 = vld [vmem:[%s1859_s1 + $0xf0] sm:$0xff]   ;;  %v1416_v30 = vld [vmem:[%s1859_s1 + $0xf8] sm:$0xff]   ;;  %v1420_v35 = vld [vmem:[%s1859_s1 + $0x140] sm:$0xff]   ;;  %v165_v39 = vcombine.high %v28_v34, %v28_v34  ;;  %v172_v42 = vrot.slane %v28_v34, %v1640_v41 }
   0xb   :  { %v1413_v26 = vld [vmem:[%s1859_s1 + $0x30] sm:$0xff]   ;;  %v1417_v31 = vld [vmem:[%s1859_s1 + $0x38] sm:$0xff]   ;;  %v1421_v38 = vld [vmem:[%s1859_s1 + $0x1c0] sm:$0xff]  }
   0xc   :  { %1241 = vmatpush3.bf16.msra.mxu0 %v1397_v10  ;;  %v1414_v27 = vld [vmem:[%s1859_s1 + $0xb0] sm:$0xff]   ;;  %v1418_v32 = vld [vmem:[%s1859_s1 + $0xb8] sm:$0xff]   ;;  %v1644_v43 = vrot.slane %v165_v39, %v1640_v41  ;;  %v180_v44 = vcombine.high %v172_v42, %v172_v42  ;;  %v188_v45 = vrot.slane %v172_v42, %v1640_v41  ;;  %v1422_v48 = vld [vmem:[%s1859_s1 + $0x100] sm:$0xff]  }
   0xd   :  { %1263 = vmatpush3.bf16.msra.mxu1 %v1398_v11  ;;  %1242 = vmatprep.subr.bf16.mxu0 %v1399_v12  ;;  %v1424_v51 = vld [vmem:[%s1859_s1 + $0x148] sm:$0xff]   ;;  %v1423_v53 = vld [vmem:[%s1859_s1 + $0x180] sm:$0xff]   ;;  %v1428_v57 = vld [vmem:[%s1859_s1 + $0x150] sm:$0xff]  }
   0xe   :  { %1264 = vmatprep.subr.bf16.mxu1 %v1400_v13  ;;  %v181_v46 = vcombine.high %v1644_v43, %v1644_v43  ;;  %v202_v47 = vrot.slane %v180_v44, %v1640_v41  ;;  %v210_v50 = vcombine.high %v188_v45, %v188_v45  ;;  %v1425_v54 = vld [vmem:[%s1859_s1 + $0x1c8] sm:$0xff]   ;;  %v1429_v59 = vld [vmem:[%s1859_s1 + $0x1d0] sm:$0xff]   ;;  %v1432_v61 = vld [vmem:[%s1859_s1 + $0x158] sm:$0xff]  }
   0xf   :  { %v1426_v56 = vld [vmem:[%s1859_s1 + $0x108] sm:$0xff]   ;;  %v1430_v60 = vld [vmem:[%s1859_s1 + $0x110] sm:$0xff]   ;;  %v1433_v63 = vld [vmem:[%s1859_s1 + $0x1d8] sm:$0xff]  }
  0x10   :  { %1243 = vmatpush3.bf16.msra.mxu0 %v1401_v14  ;;  %v209_v49 = vrot.slane %v181_v46, %v1640_v41  ;;  %638 = vmatprep.mubr.bf16.mxu0 %v202_v47  ;;  %v212_v52 = vcombine.high %v202_v47, %v202_v47  ;;  %v1427_v58 = vld [vmem:[%s1859_s1 + $0x188] sm:$0xff]   ;;  %v1431_v62 = vld [vmem:[%s1859_s1 + $0x190] sm:$0xff]   ;;  %v1434_v0 = vld [vmem:[%s1859_s1 + $0x118] sm:$0xff]  }
  0x11   :  { %1265 = vmatpush3.bf16.msra.mxu1 %v1402_v15  ;;  %1244 = vmatprep.subr.bf16.mxu0 %v1403_v16  ;;  %v1436_v1 = vld [vmem:[%s1859_s1 + $0x160] sm:$0xff]   ;;  %v1435_v2 = vld [vmem:[%s1859_s1 + $0x198] sm:$0xff]   ;;  %v1440_v5 = vld [vmem:[%s1859_s1 + $0x168] sm:$0xff]  }
  0x12   :  { %1266 = vmatprep.subr.bf16.mxu1 %v1404_v17  ;;  %v213_v55 = vcombine.high %v209_v49, %v209_v49  ;;  %678 = vmatprep.mubr.bf16.mxu1 %v212_v52  ;;  %v1437_v3 = vld [vmem:[%s1859_s1 + $0x1e0] sm:$0xff]   ;;  %v1441_v7 = vld [vmem:[%s1859_s1 + $0x1e8] sm:$0xff]   ;;  %v1444_v9 = vld [vmem:[%s1859_s1 + $0x170] sm:$0xff]  }
  0x13   :  { %v1438_v4 = vld [vmem:[%s1859_s1 + $0x120] sm:$0xff]   ;;  %v1442_v8 = vld [vmem:[%s1859_s1 + $0x128] sm:$0xff]  }
  0x14   :  { %1245 = vmatpush3.bf16.msra.mxu0 %v1405_v18  ;;  %v1439_v6 = vld [vmem:[%s1859_s1 + $0x1a0] sm:$0xff]  }
  0x15   :  { %1267 = vmatpush3.bf16.msra.mxu1 %v1406_v19  ;;  %1246 = vmatprep.subr.bf16.mxu0 %v1407_v20 }
  0x16   :  { %1268 = vmatprep.subr.bf16.mxu1 %v1408_v21 }
  0x18   :  { %1247 = vmatpush3.bf16.msra.mxu0 %v1409_v22 }
  0x19   :  { %1269 = vmatpush3.bf16.msra.mxu1 %v1410_v23  ;;  %1248 = vmatprep.subr.bf16.mxu0 %v1411_v24 }
  0x1a   :  { %1270 = vmatprep.subr.bf16.mxu1 %v1412_v25 }
  0x1c   :  { %1249 = vmatpush3.bf16.msra.mxu0 %v1413_v26 }
  0x1d   :  { %1271 = vmatpush3.bf16.msra.mxu1 %v1414_v27  ;;  %1250 = vmatprep.subr.bf16.mxu0 %v1415_v29 }
  0x1e   :  { %1272 = vmatprep.subr.bf16.mxu1 %v1416_v30 }
  0x20   :  { %1251 = vmatpush3.bf16.msra.mxu0 %v1417_v31 }
  0x21   :  { %1273 = vmatpush3.bf16.msra.mxu1 %v1418_v32  ;;  %1280 = vmatprep.subr.bf16.mxu0 %v1420_v35 }
  0x22   :  { %1302 = vmatprep.subr.bf16.mxu1 %v1421_v38 }
  0x23   :  { %639 = vmatmul.mubr.bf16.vlgmr.msra.gmra.mrb[0].mxu0 %v188_v45 }
  0x24   :  { %1281 = vmatpush3.bf16.msra.mxu0 %v1422_v48  ;;  %679 = vmatmul.mubr.bf16.vlgmr.msra.gmra.mrb[0].mxu1 %v210_v50 }
  0x25   :  { %1282 = vmatprep.subr.bf16.mxu0 %v1424_v51  ;;  %1303 = vmatpush3.bf16.msra.mxu1 %v1423_v53 }
  0x26   :  { %718 = vmatprep.mubr.bf16.mxu0 %v209_v49  ;;  %1304 = vmatprep.subr.bf16.mxu1 %v1425_v54 }
  0x27   :  { %758 = vmatprep.mubr.bf16.mxu1 %v213_v55 }
  0x28   :  { %1283 = vmatpush3.bf16.msra.mxu0 %v1426_v56 }
  0x29   :  { %1284 = vmatprep.subr.bf16.mxu0 %v1428_v57  ;;  %1305 = vmatpush3.bf16.msra.mxu1 %v1427_v58 }
  0x2a   :  { %1306 = vmatprep.subr.bf16.mxu1 %v1429_v59 }
  0x2c   :  { %1285 = vmatpush3.bf16.msra.mxu0 %v1430_v60 }
  0x2d   :  { %1286 = vmatprep.subr.bf16.mxu0 %v1432_v61  ;;  %1307 = vmatpush3.bf16.msra.mxu1 %v1431_v62 }
  0x2e   :  { %1308 = vmatprep.subr.bf16.mxu1 %v1433_v63 }
  0x30   :  { %1287 = vmatpush3.bf16.msra.mxu0 %v1434_v0 }
  0x31   :  { %1288 = vmatprep.subr.bf16.mxu0 %v1436_v1  ;;  %1309 = vmatpush3.bf16.msra.mxu1 %v1435_v2 }
  0x32   :  { %1310 = vmatprep.subr.bf16.mxu1 %v1437_v3 }
  0x34   :  { %1289 = vmatpush3.bf16.msra.mxu0 %v1438_v4 }
  0x35   :  { %1290 = vmatprep.subr.bf16.mxu0 %v1440_v5 }
  0x36   :  { %12 = vsyncpa [#allocation3], 0  ;;  %1311 = vmatpush3.bf16.msra.mxu1 %v1439_v6  ;;  %v1443_v10 = vld [vmem:[%s1859_s1 + $0x1a8] sm:$0xff]   ;;  %v1445_v11 = vld [vmem:[%s1859_s1 + $0x1f0] sm:$0xff]   ;;  %v195_v17 = vrot.slane %v1644_v43, %v1640_v41  ;;  %v1485_v23 = vmov 0.0|0.0   ;;  %vm1486_vm0 = vmmov 0  }
  0x37   :  { %1312 = vmatprep.subr.bf16.mxu1 %v1441_v7  ;;  %v1446_v12 = vld [vmem:[%s1859_s1 + $0x130] sm:$0xff]   ;;  %v1448_v13 = vld [vmem:[%s1859_s1 + $0x178] sm:$0xff]   ;;  %v870_v20 = vld [vmem:[%s1861_s3] sm:$0xff]  ;;  %v1487_v26 = vmov 0.0   ;;  %v1488_v63 = vmov 683565275  }
  0x38   :  { %1291 = vmatpush3.bf16.msra.mxu0 %v1442_v8  ;;  %v1447_v14 = vld [vmem:[%s1859_s1 + $0x1b0] sm:$0xff]   ;;  %v1449_v15 = vld [vmem:[%s1859_s1 + $0x1f8] sm:$0xff]   ;;  %v211_v19 = vcombine.high %v195_v17, %v195_v17  ;;  %v871_v21 = vld [vmem:[%s1861_s3 + $0x8] sm:$0xff]  ;;  %v1489_v1 = vmov 2475754826   ;;  %vm881_vm13 = vcmask 261120  }
  0x39   :  { %1292 = vmatprep.subr.bf16.mxu0 %v1444_v9  ;;  %v1450_v16 = vld [vmem:[%s1859_s1 + $0x138] sm:$0xff]   ;;  %v872_v22 = vld [vmem:[%s1861_s3 + $0x10] sm:$0xff]  ;;  %v1357_v24 = vpack.c.bf16 %v871_v21, %v870_v20  ;;  %v1159_v29 = vld [vmem:[%s1860_s2] ss:$0 sm:$0xff]  ;;  %v1490_v4 = vmov 2131351028  }
  0x3a   :  { %1313 = vmatpush3.bf16.msra.mxu1 %v1443_v10  ;;  %v1451_v18 = vld [vmem:[%s1859_s1 + $0x1b8] sm:$0xff]   ;;  %v1491_v7 = vmov 2102212464   ;;  %v1492_v10 = vmov 920167782   ;;  %s1494_s29 = smov [#allocation2]  }
  0x3b   :  { %1314 = vmatprep.subr.bf16.mxu1 %v1445_v11  ;;  %v873_v25 = vld [vmem:[%s1861_s3 + $0x18] sm:$0xff]  ;;  %s1151_s30 = sshll.u32 %s1494_s29, 4  ;;  %s1152_s30 = int_to_ptr.vmem [resolvable:$true] %s1151_s30 }
  0x3c   :  { %1293 = vmatpush3.bf16.msra.mxu0 %v1446_v12  ;;  %v1360_v27 = vpack.c.bf16 %v873_v25, %v872_v22  ;;  %s1460_s8 = scalar_lea.vmem %s1152_s30, 32  ;;  %p1465_p1 = scmp.lt.s32.totalorder %s1152_s30, %s1152_s30 }
  0x3d   :  { %1294 = vmatprep.subr.bf16.mxu0 %v1448_v13  ;;  %v1493_v13 = vmov 1326507024   ;;  %p1461_p0 = scmp.ne.s32.totalorder %s1152_s30, %s1460_s8  ;;  %p1466_p2 = scmp.lt.s32.totalorder %s1460_s8, %s1460_s8 }
  0x3e   :  { %1315 = vmatpush3.bf16.msra.mxu1 %v1447_v14 }
  0x3f   :  { %1316 = vmatprep.subr.bf16.mxu1 %v1449_v15  ;;  %p1467_p3 = por %p1466_p2, %p1465_p1 }
  0x40   :  { %1295 = vmatpush3.bf16.msra.mxu0 %v1450_v16 }
  0x41   :  { %1356 = vmatprep.subr.bf16.mxu0 %v1485_v23  ;;  %p1468_p4 = pnand %p1467_p3, %p1461_p0 }
  0x42   :  { %1317 = vmatpush3.bf16.msra.mxu1 %v1451_v18 }
  0x43   :  { %719 = vmatmul.mubr.bf16.vlgmr.msra.gmra.mrb[4].mxu0 %v195_v17  ;;  %1362 = vmatprep.subr.bf16.mxu1 %v1485_v23 }
  0x44   :  { %1342 = vmatprep.mubr.msk.f32.mxu0 %vm1486_vm0, %v1487_v26  ;;  %1358 = vmatpush3.bf16.msra.mxu0 %v1357_v24 }
  0x45   :  { %759 = vmatmul.mubr.bf16.vlgmr.msra.gmra.mrb[4].mxu1 %v211_v19  ;;  %1359 = vmatprep.subr.bf16.mxu0 %v1485_v23 }
  0x46   :  { %1353 = vmatprep.mubr.msk.f32.mxu1 %vm1486_vm0, %v1487_v26 }
  0x48   :  { %1361 = vmatpush3.bf16.msra.mxu0 %v1360_v27 }
  0xf6   :  { %v1252_v28 = vpop.f32.mrb[0].mxu0 }
  0xf7   :  { %v1253_v30 = vpop.f32.mrb[1].mxu0  ;;  %v1274_v31 = vpop.f32.mrb[0].mxu1 }
  0xf8   :  { %v1254_v32 = vadd.f32 %v1253_v30, %v1252_v28  ;;  %v1255_v33 = vpop.f32.mrb[2].mxu0  ;;  %v1275_v34 = vpop.f32.mrb[1].mxu1 }
  0xf9   :  { %v1256_v35 = vpop.f32.mrb[3].mxu0  ;;  %v1276_v37 = vadd.f32 %v1275_v34, %v1274_v31  ;;  %v1277_v38 = vpop.f32.mrb[2].mxu1 }
  0xfa   :  { %v641_v36 = vadd.f32 %v1254_v32, %v1159_v29  ;;  %v1278_v39 = vpop.f32.mrb[3].mxu1 }
  0xfc   :  { %v681_v40 = vadd.f32 %v1276_v37, %v641_v36 }
 0x116   :  { %v1296_v41 = vpop.f32.mrb[4].mxu0 }
 0x117   :  { %v1297_v42 = vpop.f32.mrb[5].mxu0 }
 0x118   :  { %v1318_v43 = vpop.f32.mrb[4].mxu1  ;;  %v1298_v44 = vadd.f32 %v1297_v42, %v1296_v41  ;;  %v1299_v45 = vpop.f32.mrb[6].mxu0 }
 0x119   :  { %v1319_v46 = vpop.f32.mrb[5].mxu1  ;;  %v1300_v47 = vpop.f32.mrb[7].mxu0 }
 0x11a   :  { %v721_v48 = vadd.f32 %v1298_v44, %v681_v40  ;;  %v1320_v49 = vadd.f32 %v1319_v46, %v1318_v43  ;;  %v1321_v50 = vpop.f32.mrb[6].mxu1 }
 0x11b   :  { %v1322_v51 = vpop.f32.mrb[7].mxu1 }
 0x11c   :  { %v1761_v52 = vadd.f32 %v1320_v49, %v721_v48 }
 0x11e   :  { %v769_v53 = vand.u32 2139095040, %v1761_v52  ;;  %v766_v57 = vand.u32 2147483647, %v1761_v52  ;;  %vm768_vm8 = vcmp.lt.s32.totalorder %v1761_v52, 0  ;;  %vm858_vm14 = vweird.f32 %v1761_v52 }
 0x120   :  { %v770_v54 = vshrl.u32 %v769_v53, 23  ;;  %v773_v60 = vand.u32 8388607, %v766_v57  ;;  %vm767_vm9 = vcmp.le.f32.partialorder %v766_v57, 0.7853982 }
 0x122   :  { %v1224_v55 = vadd.s32 4294967169, %v770_v54  ;;  %v774_v15 = vor.u32 8388608, %v773_v60 }
 0x124   :  { %v776_v56 = vadd.s32 1, %v1224_v55  ;;  %v814_v30 = vshll.u32 %v774_v15, 8 }
 0x126   :  { %vm777_vm1 = vcmp.gt.s32.totalorder %v776_v56, 0 }
 0x127   :  { %v778_v58 = vsel %vm777_vm1, %v776_v56, 0 }
 0x128   :  { %v780_v59 = vand.u32 31, %v778_v58  ;;  %v779_v62 = vshrl.u32 %v778_v58, 5 }
 0x12a   :  { %v781_v61 = vsub.s32 32, %v780_v59  ;;  %v783_v0 = vshll.u32 %v1488_v63, %v780_v59  ;;  %v786_v2 = vshll.u32 %v1489_v1, %v780_v59  ;;  %v789_v6 = vshll.u32 %v1490_v4, %v780_v59 }
 0x12b   :  { %v792_v9 = vshll.u32 %v1491_v7, %v780_v59  ;;  %v795_v12 = vshll.u32 %v1492_v10, %v780_v59  ;;  %vm798_vm2 = vcmp.lt.s32.totalorder %v779_v62, 1  ;;  %vm801_vm3 = vcmp.lt.s32.totalorder %v779_v62, 4 }
 0x12c   :  { %v784_v3 = vshrl.u32 %v1489_v1, %v781_v61  ;;  %v787_v5 = vshrl.u32 %v1490_v4, %v781_v61  ;;  %v790_v8 = vshrl.u32 %v1491_v7, %v781_v61  ;;  %v793_v11 = vshrl.u32 %v1492_v10, %v781_v61 }
 0x12d   :  { %v796_v14 = vshrl.u32 %v1493_v13, %v781_v61  ;;  %v782_v25 = vshrl.u32 %v1488_v63, %v781_v61  ;;  %vm800_vm4 = vcmp.lt.s32.totalorder %v779_v62, 3  ;;  %vm799_vm5 = vcmp.lt.s32.totalorder %v779_v62, 2 }
 0x12e   :  { %v785_v16 = vor.u32 %v784_v3, %v783_v0  ;;  %v788_v17 = vor.u32 %v787_v5, %v786_v2  ;;  %v791_v18 = vor.u32 %v790_v8, %v789_v6  ;;  %v794_v19 = vor.u32 %v793_v11, %v792_v9 }
 0x12f   :  { %v797_v20 = vor.u32 %v796_v14, %v795_v12 }
 0x130   :  { %v803_v21 = vsel %vm801_vm3, %v791_v18, 2102212464  ;;  %v806_v22 = vsel %vm798_vm2, %v785_v16, %v788_v17  ;;  %v810_v24 = vsel %vm798_vm2, %v788_v17, %v791_v18  ;;  %v807_v26 = vsel %vm801_vm3, %v794_v19, 920167782 }
 0x131   :  { %v811_v27 = vsel %vm801_vm3, %v797_v20, 1326507024  ;;  %v808_v28 = vsel %vm800_vm4, %v791_v18, %v807_v26  ;;  %v802_v31 = vsel %vm798_vm2, %v782_v25, %v785_v16  ;;  %v804_v32 = vsel %vm800_vm4, %v788_v17, %v803_v21  ;;  %v1059_v25 = vld [vmem:[%s1863_s5] sm:$0xff]  ;;  %v1060_v26 = vld [vmem:[%s1863_s5 + $0x8] sm:$0xff] }
 0x132   :  { %v812_v29 = vsel %vm800_vm4, %v794_v19, %v811_v27  ;;  %v809_v33 = vsel %vm799_vm5, %v806_v22, %v808_v28  ;;  %v805_v39 = vsel %vm799_vm5, %v802_v31, %v804_v32  ;;  %v1061_v27 = vld [vmem:[%s1863_s5 + $0x10] sm:$0xff]  ;;  %v1363_v28 = vpack.c.bf16 %v1060_v26, %v1059_v25 }
 0x133   :  { %v813_v34 = vsel %vm799_vm5, %v810_v24, %v812_v29  ;;  %v1781_v37 = vmul.u32.u64.low %v814_v30, %v809_v33  ;;  %v1782_v38 = vmul.u32.u64.high %v814_v30, %v809_v33, %v1781_v37  ;;  %v821_v41 = vmul.u32 %v814_v30, %v805_v39 }
 0x134   :  { %v1778_v35 = vmul.u32.u64.low %v814_v30, %v813_v34  ;;  %v1779_v36 = vmul.u32.u64.high %v814_v30, %v813_v34, %v1778_v35  ;;  %1364 = vmatpush3.bf16.msra.mxu1 %v1363_v28  ;;  %v1228_v30 = vld [vmem:[%s1862_s4] ss:$0 sm:$0xff] }
 0x135   :  { %v824_v40 = vadd.s32 1, %v1782_v38  ;;  %1365 = vmatprep.subr.bf16.mxu1 %v1485_v23 }
 0x136   :  { %vm823_vm6 = vc.u32 %v1779_v36, %v1781_v37  ;;  %v822_v54 = vadd.s32 %v1781_v37, %v1779_v36 }
 0x137   :  { %v825_v42 = vsel %vm823_vm6, %v824_v40, %v1782_v38 }
 0x138   :  { %v826_v43 = vadd.s32 %v825_v42, %v821_v41 }
 0x13a   :  { %v827_v44 = vadd.s32 536870912, %v826_v43 }
 0x13c   :  { %v828_v45 = vshrl.u32 %v827_v44, 30 }
 0x13e   :  { %v829_v46 = vshll.u32 %v828_v45, 30  ;;  %v852_v6 = vsub.s32 4, %v828_v45 }
 0x140   :  { %v830_v47 = vsub.s32 %v826_v43, %v829_v46  ;;  %v853_v11 = vsel %vm768_vm8, %v852_v6, %v828_v45 }
 0x141   :  { %v855_v14 = vsel %vm767_vm9, 0, %v853_v11 }
 0x142   :  { %v832_v48 = vsub.s32 0, %v830_v47  ;;  %v859_v15 = vadd.s32 3, %v855_v14 }
 0x144   :  { %v1225_v49 = vmin.u32 %v832_v48, %v830_v47  ;;  %v860_v16 = vand.u32 3, %v859_v15 }
 0x146   :  { %v834_v50 = vclz %v1225_v49  ;;  %vm865_vm10 = vcmp.eq.s32.totalorder %v860_v16, 2  ;;  %vm862_vm11 = vcmp.eq.s32.totalorder %v860_v16, 0  ;;  %vm861_vm12 = vcmp.lt.s32.totalorder %v860_v16, 2 }
 0x148   :  { %v1226_v51 = vadd.s32 4294967294, %v834_v50 }
 0x14a   :  { %vm1227_vm7 = vcmp.lt.s32.totalorder %v1226_v51, 0 }
 0x14b   :  { %v837_v53 = vsel %vm1227_vm7, 0, %v1226_v51 }
 0x14c   :  { %v838_v55 = vsub.s32 32, %v837_v53  ;;  %v842_v56 = vsub.s32 4294967266, %v837_v53  ;;  %v839_v58 = vshll.u32 %v830_v47, %v837_v53 }
 0x14e   :  { %v840_v59 = vshrl.u32 %v822_v54, %v838_v55  ;;  %v843_v60 = vadd.s32 127, %v842_v56 }
 0x150   :  { %v841_v61 = vor.u32 %v840_v59, %v839_v58  ;;  %v844_v62 = vshll.u32 %v843_v60, 23 }
 0x152   :  { %v845_v0 = vor.u32 4788187, %v844_v62  ;;  %v848_v3 = vcvt.s32.f32 %v841_v61 }
 0x154   :  { %v846_v2 = vand.u32 2147483647, %v845_v0 }
 0x156   :  { %v849_v5 = vmul.f32 %v848_v3, %v846_v2 }
 0x158   :  { %v850_v8 = vxor.u32 2147483648, %v849_v5 }
 0x15a   :  { %v851_v9 = vsel %vm768_vm8, %v850_v8, %v849_v5 }
 0x15b   :  { %v854_v12 = vsel %vm767_vm9, %v1761_v52, %v851_v9  ;;  %v1062_v52 = vld [vmem:[%s1863_s5 + $0x18] sm:$0xff] }
 0x15c   :  { %1452 = vcosq.f32 %v854_v12  ;;  %v1366_v29 = vpack.c.bf16 %v1062_v52, %v1061_v27 }
 0x15d   :  { %1454 = vsinq.f32 %v854_v12 }
 0x15e   :  { %1367 = vmatpush3.bf16.msra.mxu1 %v1366_v29 }
 0x166   :  { %v1453_v17 = vpop.eup %1452 }
 0x167   :  { %v1455_v18 = vpop.eup %1454  ;;  %v866_v19 = vxor.u32 2147483648, %v1453_v17 }
 0x168   :  { %v863_v20 = vxor.u32 2147483648, %v1455_v18 }
 0x169   :  { %v867_v21 = vsel %vm865_vm10, %v866_v19, %v1455_v18 }
 0x16a   :  { %v864_v22 = vsel %vm862_vm11, %v1453_v17, %v863_v20 }
 0x16b   :  { %v868_v57 = vsel %vm861_vm12, %v864_v22, %v867_v21  ;;  %vm1143_vm12 = vcmask 58368  }
 0x16c   :  { %v869_v24 = vsel %vm858_vm14, nan, %v868_v57 }
 0x16d   :  { %1343 = vmatmul.mubr.msk.f32.vlgmr.msra.gmra.mrb[8].mxu0 %vm881_vm13, %v869_v24 }
 0x240   :  { %v951_v31 = vpop.f32.mrb[8].mxu0 }
 0x241   :  { %v1810_v32 = vadd.f32 %v1228_v30, %v951_v31  ;;  %v1344_v33 = vpop.f32.mrb[9].mxu0 }
 0x243   :  { %v958_v34 = vand.u32 2139095040, %v1810_v32  ;;  %v955_v38 = vand.u32 2147483647, %v1810_v32  ;;  %vm957_vm6 = vcmp.lt.s32.totalorder %v1810_v32, 0  ;;  %vm1047_vm11 = vweird.f32 %v1810_v32 }
 0x245   :  { %v959_v35 = vshrl.u32 %v958_v34, 23  ;;  %v962_v23 = vand.u32 8388607, %v955_v38  ;;  %vm956_vm7 = vcmp.le.f32.partialorder %v955_v38, 0.7853982 }
 0x247   :  { %v1230_v36 = vadd.s32 4294967169, %v959_v35  ;;  %v963_v54 = vor.u32 8388608, %v962_v23 }
 0x249   :  { %v965_v37 = vadd.s32 1, %v1230_v36 }
 0x24b   :  { %vm966_vm15 = vcmp.gt.s32.totalorder %v965_v37, 0 }
 0x24c   :  { %v967_v39 = vsel %vm966_vm15, %v965_v37, 0 }
 0x24d   :  { %v969_v40 = vand.u32 31, %v967_v39  ;;  %v968_v42 = vshrl.u32 %v967_v39, 5 }
 0x24f   :  { %v970_v41 = vsub.s32 32, %v969_v40  ;;  %v972_v43 = vshll.u32 %v1488_v63, %v969_v40  ;;  %v975_v44 = vshll.u32 %v1489_v1, %v969_v40  ;;  %v978_v47 = vshll.u32 %v1490_v4, %v969_v40 }
 0x250   :  { %v981_v49 = vshll.u32 %v1491_v7, %v969_v40  ;;  %v984_v51 = vshll.u32 %v1492_v10, %v969_v40  ;;  %vm987_vm0 = vcmp.lt.s32.totalorder %v968_v42, 1  ;;  %vm990_vm1 = vcmp.lt.s32.totalorder %v968_v42, 4 }
 0x251   :  { %v973_v45 = vshrl.u32 %v1489_v1, %v970_v41  ;;  %v976_v46 = vshrl.u32 %v1490_v4, %v970_v41  ;;  %v979_v48 = vshrl.u32 %v1491_v7, %v970_v41  ;;  %v982_v50 = vshrl.u32 %v1492_v10, %v970_v41 }
 0x252   :  { %v985_v53 = vshrl.u32 %v1493_v13, %v970_v41  ;;  %v971_v62 = vshrl.u32 %v1488_v63, %v970_v41  ;;  %vm989_vm2 = vcmp.lt.s32.totalorder %v968_v42, 3  ;;  %vm988_vm3 = vcmp.lt.s32.totalorder %v968_v42, 2 }
 0x253   :  { %v974_v55 = vor.u32 %v973_v45, %v972_v43  ;;  %v977_v56 = vor.u32 %v976_v46, %v975_v44  ;;  %v980_v58 = vor.u32 %v979_v48, %v978_v47  ;;  %v983_v59 = vor.u32 %v982_v50, %v981_v49 }
 0x254   :  { %v986_v1 = vor.u32 %v985_v53, %v984_v51  ;;  %v1003_v13 = vshll.u32 %v963_v54, 8 }
 0x255   :  { %v992_v60 = vsel %vm990_vm1, %v980_v58, 2102212464  ;;  %v995_v4 = vsel %vm987_vm0, %v974_v55, %v977_v56  ;;  %v999_v61 = vsel %vm987_vm0, %v977_v56, %v980_v58  ;;  %v996_v7 = vsel %vm990_vm1, %v983_v59, 920167782 }
 0x256   :  { %v1000_v0 = vsel %vm990_vm1, %v986_v1, 1326507024  ;;  %v997_v10 = vsel %vm989_vm2, %v980_v58, %v996_v7  ;;  %v991_v3 = vsel %vm987_vm0, %v971_v62, %v974_v55  ;;  %v993_v5 = vsel %vm989_vm2, %v977_v56, %v992_v60  ;;  %v1234_v56 = vld [vmem:[%s1864_s6] ss:$0 sm:$0xff] }
 0x257   :  { %v1001_v2 = vsel %vm989_vm2, %v983_v59, %v1000_v0  ;;  %v998_v6 = vsel %vm988_vm3, %v995_v4, %v997_v10  ;;  %v994_v15 = vsel %vm988_vm3, %v991_v3, %v993_v5 }
 0x258   :  { %v1002_v8 = vsel %vm988_vm3, %v999_v61, %v1001_v2  ;;  %v1830_v12 = vmul.u32.u64.low %v1003_v13, %v998_v6  ;;  %v1831_v14 = vmul.u32.u64.high %v1003_v13, %v998_v6, %v1830_v12  ;;  %v1010_v16 = vmul.u32 %v1003_v13, %v994_v15 }
 0x259   :  { %v1827_v9 = vmul.u32.u64.low %v1003_v13, %v1002_v8  ;;  %v1828_v11 = vmul.u32.u64.high %v1003_v13, %v1002_v8, %v1827_v9 }
 0x25a   :  { %v1013_v63 = vadd.s32 1, %v1831_v14 }
 0x25b   :  { %vm1012_vm4 = vc.u32 %v1828_v11, %v1830_v12  ;;  %v1011_v28 = vadd.s32 %v1830_v12, %v1828_v11 }
 0x25c   :  { %v1014_v17 = vsel %vm1012_vm4, %v1013_v63, %v1831_v14 }
 0x25d   :  { %v1015_v18 = vadd.s32 %v1014_v17, %v1010_v16 }
 0x25f   :  { %v1016_v19 = vadd.s32 536870912, %v1015_v18 }
 0x261   :  { %v1017_v20 = vshrl.u32 %v1016_v19, 30 }
 0x263   :  { %v1018_v21 = vshll.u32 %v1017_v20, 30  ;;  %v1041_v23 = vsub.s32 4, %v1017_v20 }
 0x265   :  { %v1019_v22 = vsub.s32 %v1015_v18, %v1018_v21  ;;  %v1042_v43 = vsel %vm957_vm6, %v1041_v23, %v1017_v20 }
 0x266   :  { %v1044_v45 = vsel %vm956_vm7, 0, %v1042_v43 }
 0x267   :  { %v1021_v57 = vsub.s32 0, %v1019_v22  ;;  %v1048_v46 = vadd.s32 3, %v1044_v45 }
 0x269   :  { %v1231_v24 = vmin.u32 %v1021_v57, %v1019_v22  ;;  %v1049_v47 = vand.u32 3, %v1048_v46 }
 0x26b   :  { %v1023_v25 = vclz %v1231_v24  ;;  %vm1054_vm8 = vcmp.eq.s32.totalorder %v1049_v47, 2  ;;  %vm1051_vm9 = vcmp.eq.s32.totalorder %v1049_v47, 0  ;;  %vm1050_vm10 = vcmp.lt.s32.totalorder %v1049_v47, 2 }
 0x26d   :  { %v1232_v26 = vadd.s32 4294967294, %v1023_v25 }
 0x26f   :  { %vm1233_vm5 = vcmp.lt.s32.totalorder %v1232_v26, 0 }
 0x270   :  { %v1026_v27 = vsel %vm1233_vm5, 0, %v1232_v26 }
 0x271   :  { %v1027_v52 = vsub.s32 32, %v1026_v27  ;;  %v1031_v29 = vsub.s32 4294967266, %v1026_v27  ;;  %v1028_v30 = vshll.u32 %v1019_v22, %v1026_v27 }
 0x273   :  { %v1029_v31 = vshrl.u32 %v1011_v28, %v1027_v52  ;;  %v1032_v33 = vadd.s32 127, %v1031_v29 }
 0x275   :  { %v1030_v34 = vor.u32 %v1029_v31, %v1028_v30  ;;  %v1033_v35 = vshll.u32 %v1032_v33, 23 }
 0x277   :  { %v1034_v36 = vor.u32 4788187, %v1033_v35  ;;  %v1037_v39 = vcvt.s32.f32 %v1030_v34 }
 0x279   :  { %v1035_v37 = vand.u32 2147483647, %v1034_v36 }
 0x27b   :  { %v1038_v40 = vmul.f32 %v1037_v39, %v1035_v37 }
 0x27d   :  { %v1039_v41 = vxor.u32 2147483648, %v1038_v40 }
 0x27f   :  { %v1040_v42 = vsel %vm957_vm6, %v1039_v41, %v1038_v40 }
 0x280   :  { %v1043_v44 = vsel %vm956_vm7, %v1810_v32, %v1040_v42 }
 0x281   :  { %1456 = vcosq.f32 %v1043_v44 }
 0x282   :  { %1458 = vsinq.f32 %v1043_v44 }
 0x28b   :  { %v1457_v48 = vpop.eup %1456 }
 0x28c   :  { %v1459_v49 = vpop.eup %1458  ;;  %v1055_v50 = vxor.u32 2147483648, %v1457_v48 }
 0x28d   :  { %v1052_v51 = vxor.u32 2147483648, %v1459_v49 }
 0x28e   :  { %v1056_v53 = vsel %vm1054_vm8, %v1055_v50, %v1459_v49 }
 0x28f   :  { %v1053_v54 = vsel %vm1051_vm9, %v1457_v48, %v1052_v51 }
 0x290   :  { %v1057_v38 = vsel %vm1050_vm10, %v1053_v54, %v1056_v53 }
 0x291   :  { %v1058_v55 = vsel %vm1047_vm11, nan, %v1057_v38 }
 0x292   :  { %1354 = vmatmul.mubr.msk.f32.vlgmr.msra.gmra.mrb[8].mxu1 %vm881_vm13, %v1058_v55 }
 0x365   :  { %v1139_v58 = vpop.f32.mrb[8].mxu1 }
 0x366   :  { %v1140_v59 = vadd.f32 %v1234_v56, %v1139_v58  ;;  %v1355_v1 = vpop.f32.mrb[9].mxu1 }
 0x368   :  { %1144 = vst.msk [vmem:[#allocation2] sm:$0x3] %vm1143_vm12, %v1140_v59 }
 0x369   :  { %1471 = shalt.err (!%p1468_p4)
}
 0x36a   :  { %s1472_s11 = scalar_lea.hbm %s1865_s7, 32 }
 0x36b   :  { %p1473_p5 = scmp.ne.s32.totalorder %s1865_s7, %s1472_s11  ;;  %p1476_p6 = scmp.lt.u32.totalorder %s1472_s11, %s1865_s7 }
 0x36d   :  { %p1478_p7 = pnand %p1476_p6, %p1473_p5 }
 0x36f   :  { %1481 = shalt.err (!%p1478_p7)
}
 0x370   :  { %1154 = dma.vmem_to_hbm [thread:$0]  %s1152_s30, 32, %s1865_s7, [#allocation3]  }
 0x371   :  { %1482 = dma.done.wait [#allocation3], 32  }
 0x372   :  { %1483 = vsyncadd [#allocation3], 4294967264 }
 0x373   :  { %1158 = vsyncpa [#allocation3], 1 }

</bundles_post_ra>
